<compile_context>
chip_gen: v7x
topology: tpu7x:2x2x1
jax: 0.10.0
libtpu: 0.0.40
codegen_flags: <defaults>
</compile_context>

<pallas_src>
import functools

import jax
import jax.numpy as jnp
from jax.experimental import pallas as pl
from jax.experimental.pallas import tpu as pltpu


def _local_gconv_kernel(x_ref, adj_ref, w_ref, b_ref, o_ref):
    # x_ref:   (N, Din)            one batch element (batch dim squeezed by BlockSpec)
    # adj_ref: (S, N, N)           all graph supports, resident in VMEM
    # w_ref:   (S, Din, Dout_pad)  per-support weights, lane-dense padded
    # b_ref:   (1, Dout_pad)       bias, lane-dense padded
    # o_ref:   (N, Dout_pad)
    n_sup = adj_ref.shape[0]
    x = x_ref[...]

    acc = jnp.zeros(o_ref.shape, jnp.float32)
    # S is small and static -> simple Python unroll; two MXU passes per support.
    for s in range(n_sup):
        pre = jnp.dot(x, w_ref[s], preferred_element_type=jnp.float32)        # (N, Dout_pad)
        acc = acc + jnp.dot(adj_ref[s], pre, preferred_element_type=jnp.float32)

    acc = acc + b_ref[...]                                                     # bias broadcast
    # LeakyReLU, negative_slope = 0.01 (torch.nn.LeakyReLU default).
    o_ref[...] = jnp.maximum(acc, 0.01 * acc).astype(o_ref.dtype)


def make_local_gconv_params(w_stack, bias):
    """One-time parameter prep (hoisted out of the forward path).

    Pads the output dimension to a multiple of 128 so kernel stores are
    lane-dense; padded columns are zero so LeakyReLU(0 + 0) = 0 and they are
    sliced off after the kernel.
    """
    S, Din, Dout = w_stack.shape
    dout_pad = ((Dout + 127) // 128) * 128
    w_pad = jnp.pad(w_stack.astype(jnp.float32),
                    ((0, 0), (0, 0), (0, dout_pad - Dout)))        # (S, Din, Dout_pad)
    b_pad = jnp.pad(bias.astype(jnp.float32),
                    (0, dout_pad - Dout)).reshape(1, dout_pad)     # (1, Dout_pad)
    return w_pad, b_pad


@functools.partial(jax.jit, static_argnames=("dout",))
def local_gconv(x, adj_stack, w_pad, bias_pad, *, dout):
    """x: (B,N,Din), adj_stack: (S,N,N), w_pad: (S,Din,Dout_pad), bias_pad: (1,Dout_pad)."""
    B, N, Din = x.shape
    S = adj_stack.shape[0]
    dout_pad = w_pad.shape[-1]

    out = pl.pallas_call(
        _local_gconv_kernel,
        out_shape=jax.ShapeDtypeStruct((B, N, dout_pad), jnp.float32),
        grid_spec=pltpu.PrefetchScalarGridSpec(
            num_scalar_prefetch=0,
            grid=(B,),                                           # one step per batch element
            in_specs=[
                pl.BlockSpec((None, N, Din), lambda b: (b, 0, 0)),        # per-batch x slice
                pl.BlockSpec((S, N, N), lambda b: (0, 0, 0)),             # resident
                pl.BlockSpec((S, Din, dout_pad), lambda b: (0, 0, 0)),    # resident
                pl.BlockSpec((1, dout_pad), lambda b: (0, 0)),            # resident
            ],
            out_specs=pl.BlockSpec((None, N, dout_pad), lambda b: (b, 0, 0)),
        ),
        compiler_params=pltpu.CompilerParams(
            dimension_semantics=("parallel",),                  # shards across TCs on v7x
        ),
    )(x.astype(jnp.float32), adj_stack.astype(jnp.float32), w_pad, bias_pad)

    # Single lane-axis slice to strip the Dout padding.
    return out[:, :, :dout].astype(x.dtype)


def glorot_init(key, shape):
    """Glorot/Xavier uniform as in the reference `glorot` helper."""
    fan_in, fan_out = shape[0], shape[1]
    init_range = jnp.sqrt(6.0 / (fan_in + fan_out))
    return jax.random.uniform(key, shape, jnp.float32, -init_range, init_range)


def reference_local_gconv(x, adj_stack, w_stack, bias):
    """Pure-JAX reference mirroring the PyTorch forward exactly."""
    outs = []
    for s in range(adj_stack.shape[0]):
        pre_sup = jnp.einsum('ijk,kl->ijl', x, w_stack[s])
        outs.append(jnp.einsum('ij,kjl->kil', adj_stack[s], pre_sup))
    out = sum(outs) + bias
    return jnp.where(out >= 0, out, 0.01 * out)


if __name__ == "__main__":
    key = jax.random.PRNGKey(0)

    B = 2                 # batch
    N = 43                # local_graph_vert from the module
    Din = 16              # input_dim
    Dout = 32             # output_dim
    S = 2                 # number of supports (len(options.sample_adj))

    k_x, k_adj, *k_w = jax.random.split(key, 2 + S)

    x = jax.random.normal(k_x, (B, N, Din), jnp.float32)
    # Deterministic synthetic adjacency supports (dense, like sample_adj mats).
    adj_stack = jax.random.uniform(k_adj, (S, N, N), jnp.float32)
    # Per-support glorot weights, zero bias (matches glorot()/zeros()).
    w_stack = jnp.stack([glorot_init(k_w[s], (Din, Dout)) for s in range(S)])
    bias = jnp.zeros((Dout,), jnp.float32)

    # One-time (per parameter set) prep, outside the forward path.
    w_pad, bias_pad = make_local_gconv_params(w_stack, bias)

    out = local_gconv(x, adj_stack, w_pad, bias_pad, dout=Dout)
    out = jax.block_until_ready(out)

    ref = reference_local_gconv(x, adj_stack, w_stack, bias)
    assert out.shape == (B, N, Dout), out.shape
    assert jnp.allclose(out, ref, atol=1e-3, rtol=1e-4), "mismatch vs reference"

    print("KERNEL_OK")
</pallas_src>

<mosaic_0001>
module attributes {stable_mosaic.version = 11 : i64} {
  func.func @_local_gconv_kernel(%arg0: i32, %arg1: memref<1x43x16xf32, #tpu.memory_space<vmem>>, %arg2: memref<2x43x43xf32, #tpu.memory_space<vmem>>, %arg3: memref<2x16x128xf32, #tpu.memory_space<vmem>>, %arg4: memref<1x128xf32, #tpu.memory_space<vmem>>, %arg5: memref<1x43x128xf32, #tpu.memory_space<vmem>>) attributes {dimension_semantics = [#tpu.dimension_semantics<parallel>], iteration_bounds = array<i64: 2>, scalar_prefetch = 0 : i64, scratch_operands = 0 : i64, tpu.core_type = #tpu.core_type<tc>, window_params = [{transform_indices = @transform_0, window_bounds = array<i64: 1, 43, 16>}, {pipeline_mode = #tpu.pipeline_mode<synchronous>, transform_indices = @transform_1, window_bounds = array<i64: 2, 43, 43>}, {pipeline_mode = #tpu.pipeline_mode<synchronous>, transform_indices = @transform_2, window_bounds = array<i64: 2, 16, 128>}, {pipeline_mode = #tpu.pipeline_mode<synchronous>, transform_indices = @transform_3, window_bounds = array<i64: 1, 128>}, {transform_indices = @transform_4, window_bounds = array<i64: 1, 43, 128>}]} {
    %c0 = arith.constant 0 : index
    %c0_0 = arith.constant 0 : index
    %c0_1 = arith.constant 0 : index
    %0 = vector.load %arg1[%c0, %c0_0, %c0_1] : memref<1x43x16xf32, #tpu.memory_space<vmem>>, vector<1x43x16xf32>
    %1 = vector.shape_cast %0 : vector<1x43x16xf32> to vector<43x16xf32>
    %cst = arith.constant 0.000000e+00 : f32
    %2 = vector.broadcast %cst : f32 to vector<43x128xf32>
    %c0_2 = arith.constant 0 : index
    %c0_3 = arith.constant 0 : index
    %c0_4 = arith.constant 0 : index
    %3 = vector.load %arg3[%c0_2, %c0_3, %c0_4] : memref<2x16x128xf32, #tpu.memory_space<vmem>>, vector<1x16x128xf32>
    %4 = vector.shape_cast %3 : vector<1x16x128xf32> to vector<16x128xf32>
    %cst_5 = arith.constant dense<0.000000e+00> : vector<43x128xf32>
    %5 = tpu.matmul %1, %4, %cst_5 {dimension_numbers = #tpu.dot_dimension_numbers<[1], [0], [0], [1], [0, 0, 1, 1], [], []>} : vector<43x16xf32>, vector<16x128xf32>, vector<43x128xf32> -> vector<43x128xf32>
    %c0_6 = arith.constant 0 : index
    %c0_7 = arith.constant 0 : index
    %c0_8 = arith.constant 0 : index
    %6 = vector.load %arg2[%c0_6, %c0_7, %c0_8] : memref<2x43x43xf32, #tpu.memory_space<vmem>>, vector<1x43x43xf32>
    %7 = vector.shape_cast %6 : vector<1x43x43xf32> to vector<43x43xf32>
    %cst_9 = arith.constant dense<0.000000e+00> : vector<43x128xf32>
    %8 = tpu.matmul %7, %5, %cst_9 {dimension_numbers = #tpu.dot_dimension_numbers<[1], [0], [0], [1], [0, 0, 1, 1], [], []>} : vector<43x43xf32>, vector<43x128xf32>, vector<43x128xf32> -> vector<43x128xf32>
    %9 = arith.addf %2, %8 : vector<43x128xf32>
    %c1 = arith.constant 1 : index
    %c0_10 = arith.constant 0 : index
    %c0_11 = arith.constant 0 : index
    %10 = vector.load %arg3[%c1, %c0_10, %c0_11] : memref<2x16x128xf32, #tpu.memory_space<vmem>>, vector<1x16x128xf32>
    %11 = vector.shape_cast %10 : vector<1x16x128xf32> to vector<16x128xf32>
    %cst_12 = arith.constant dense<0.000000e+00> : vector<43x128xf32>
    %12 = tpu.matmul %1, %11, %cst_12 {dimension_numbers = #tpu.dot_dimension_numbers<[1], [0], [0], [1], [0, 0, 1, 1], [], []>} : vector<43x16xf32>, vector<16x128xf32>, vector<43x128xf32> -> vector<43x128xf32>
    %c1_13 = arith.constant 1 : index
    %c0_14 = arith.constant 0 : index
    %c0_15 = arith.constant 0 : index
    %13 = vector.load %arg2[%c1_13, %c0_14, %c0_15] : memref<2x43x43xf32, #tpu.memory_space<vmem>>, vector<1x43x43xf32>
    %14 = vector.shape_cast %13 : vector<1x43x43xf32> to vector<43x43xf32>
    %cst_16 = arith.constant dense<0.000000e+00> : vector<43x128xf32>
    %15 = tpu.matmul %14, %12, %cst_16 {dimension_numbers = #tpu.dot_dimension_numbers<[1], [0], [0], [1], [0, 0, 1, 1], [], []>} : vector<43x43xf32>, vector<43x128xf32>, vector<43x128xf32> -> vector<43x128xf32>
    %16 = arith.addf %9, %15 : vector<43x128xf32>
    %c0_17 = arith.constant 0 : index
    %c0_18 = arith.constant 0 : index
    %17 = vector.load %arg4[%c0_17, %c0_18] : memref<1x128xf32, #tpu.memory_space<vmem>>, vector<1x128xf32>
    %18 = vector.broadcast %17 : vector<1x128xf32> to vector<43x128xf32>
    %19 = arith.addf %16, %18 : vector<43x128xf32>
    %cst_19 = arith.constant 0.00999999977 : f32
    %20 = vector.broadcast %cst_19 : f32 to vector<43x128xf32>
    %21 = arith.mulf %20, %19 : vector<43x128xf32>
    %22 = arith.maximumf %19, %21 : vector<43x128xf32>
    %c0_20 = arith.constant 0 : index
    %c0_21 = arith.constant 0 : index
    %c0_22 = arith.constant 0 : index
    %23 = vector.load %arg5[%c0_20, %c0_21, %c0_22] : memref<1x43x128xf32, #tpu.memory_space<vmem>>, vector<1x43x128xf32>
    %24 = vector.shape_cast %23 : vector<1x43x128xf32> to vector<43x128xf32>
    %25 = vector.shape_cast %22 : vector<43x128xf32> to vector<1x43x128xf32>
    tpu.vector_store %arg5[%c0_20, %c0_21, %c0_22], %25 {strides = array<i32>} : memref<1x43x128xf32, #tpu.memory_space<vmem>>, vector<1x43x128xf32>,
    return
  }
  func.func @transform_0(%arg0: i32) -> (i32, i32, i32) {
    %c0_i32 = arith.constant 0 : i32
    %c0_i32_0 = arith.constant 0 : i32
    %c0_i32_1 = arith.constant 0 : i32
    return %arg0, %c0_i32, %c0_i32_0 : i32, i32, i32
  }
  func.func @transform_1(%arg0: i32) -> (i32, i32, i32) {
    %c0_i32 = arith.constant 0 : i32
    %c0_i32_0 = arith.constant 0 : i32
    %c0_i32_1 = arith.constant 0 : i32
    %c0_i32_2 = arith.constant 0 : i32
    return %c0_i32, %c0_i32_0, %c0_i32_1 : i32, i32, i32
  }
  func.func @transform_2(%arg0: i32) -> (i32, i32, i32) {
    %c0_i32 = arith.constant 0 : i32
    %c0_i32_0 = arith.constant 0 : i32
    %c0_i32_1 = arith.constant 0 : i32
    %c0_i32_2 = arith.constant 0 : i32
    return %c0_i32, %c0_i32_0, %c0_i32_1 : i32, i32, i32
  }
  func.func @transform_3(%arg0: i32) -> (i32, i32) {
    %c0_i32 = arith.constant 0 : i32
    %c0_i32_0 = arith.constant 0 : i32
    %c0_i32_1 = arith.constant 0 : i32
    return %c0_i32, %c0_i32_0 : i32, i32
  }
  func.func @transform_4(%arg0: i32) -> (i32, i32, i32) {
    %c0_i32 = arith.constant 0 : i32
    %c0_i32_0 = arith.constant 0 : i32
    %c0_i32_1 = arith.constant 0 : i32
    return %arg0, %c0_i32, %c0_i32_0 : i32, i32, i32
  }
}

</mosaic_0001>

<bundles_post_ra>
// kernel: local_gconv.1
= control target key start
LH: loop header
LB: loop body
LE: loop exit
PB: predicated region body
PF: predicated region fallthrough
CT: control target
= control target key end

     0   :  { %s989_s15 = smov 0   ;;  %s1088_s0 = inlined_call_operand.vmem [shape: f32[2,43,16], index: 0, kind: input, shape index: {}]   ;;  %s1089_s1 = inlined_call_operand.vmem [shape: f32[2,43,43], index: 1, kind: input, shape index: {}]   ;;  %s1090_s2 = inlined_call_operand.vmem [shape: f32[2,16,128], index: 2, kind: input, shape index: {}]   ;;  %s1091_s3 = inlined_call_operand.vmem [shape: f32[1,128], index: 3, kind: input, shape index: {}]   ;;  %s1092_s4 = inlined_call_operand.vmem [shape: f32[2,43,128], index: 4, kind: output, shape index: {}]  }
   0x1 LB: > { %s751_s16 = sadd.s32 4294967295, %s961_s15   ;;  %p755_p0 = scmp.ge.s32.totalorder %s961_s15, 1  ;;  %s961_s15 = sphi %s989_s15, %s14_s15  }
   0x2   : > { %p162_p1 = scmp.lt.s32.totalorder %s961_s15, 3 }
   0x4   : > { %p163_p2 = pnand %p755_p0, %p162_p1 }
   0x5   : > { %v204_v0 = vld [vmem:[%s1090_s2] sm:$0xff] (!%p163_p2)  ;;  %v205_v1 = vld [vmem:[%s1090_s2 + $0x8] sm:$0xff] (!%p163_p2)  ;;  %v764_v2 = vld [vmem:[%s1090_s2 + $0x10] sm:$0xff] (!%p163_p2)  ;;  %p188_p3 = scmp.lt.s32.totalorder (!%p163_p2), %s751_s16, 1  ;;  %vm206_vm0 = vcmask (!%p163_p2), 130048   ;;  %vm431_vm1 = vcmask (!%p163_p2), 351232  }
   0x6   : > { %166 = sbr.rel (%p163_p2) target bundleno = 476 (0x1dc), region = 36  ;;  %v903_v3 = vpack.c.bf16 (!%p163_p2), %v205_v1, %v204_v0  ;;  %v765_v4 = vld [vmem:[%s1090_s2 + $0x18] sm:$0xff] (!%p163_p2)  ;;  %v772_v12 = vld [vmem:[%s1089_s1 + $0x30] sm:$0xff] (!%p163_p2)  ;;  %v320_v13 = vld [vmem:[%s1089_s1] sm:$0xff] (!%p163_p2)  ;;  %vm450_vm2 = vcmask (!%p163_p2), 1042432   ;;  %vm963_vm3 = vmmov (!%p163_p2), 1  }
   0x7   : > { %v907_v5 = vpack.c.bf16 (!%p163_p2), %v765_v4, %v764_v2  ;;  %vm920_vm4 = vmpackc.low (!%p163_p2), %vm450_vm2, %vm963_vm3  ;;  %v773_v32 = vld [vmem:[%s1089_s1 + $0x38] sm:$0xff] (!%p163_p2)  ;;  %v321_v33 = vld [vmem:[%s1089_s1 + $0x8] sm:$0xff] (!%p163_p2) }
   0x8   : > { %904 = vmatprep.subr.bf16.mxu0 (!%p163_p2), %v903_v3  ;;  %v774_v34 = vld [vmem:[%s1089_s1 + $0x40] sm:$0xff] (!%p163_p2)  ;;  %v322_v35 = vld [vmem:[%s1089_s1 + $0x10] sm:$0xff] (!%p163_p2)  ;;  %v775_v36 = vld [vmem:[%s1089_s1 + $0x48] sm:$0xff] (!%p163_p2) }
   0x9   : > { %908 = vmatprep.subr.bf16.mxu1 (!%p163_p2), %v907_v5  ;;  %906 = vmatpush3.bf16.msra.mxu0 (!%p163_p2), %v903_v3  ;;  %v323_v37 = vld [vmem:[%s1089_s1 + $0x18] sm:$0xff] (!%p163_p2)  ;;  %v776_v38 = vld [vmem:[%s1089_s1 + $0x50] sm:$0xff] (!%p163_p2)  ;;  %v324_v39 = vld [vmem:[%s1089_s1 + $0x20] sm:$0xff] (!%p163_p2) }
   0xa   : > { %910 = vmatpush3.bf16.msra.mxu1 (!%p163_p2), %v907_v5  ;;  %v777_v40 = vld [vmem:[%s1089_s1 + $0x58] sm:$0x7] (!%p163_p2)  ;;  %v325_v41 = vld [vmem:[%s1089_s1 + $0x28] sm:$0x7] (!%p163_p2)  ;;  %v792_v44 = vld [vmem:[%s1091_s3] ss:$0 sm:$0xff] (!%p163_p2) }
   0xd   : > { %s1094_s16 = smov (!%p188_p3, %s751_s16), 1 }
   0xe   : > { %s945_s25 = smul.u32 48, %s1094_s16 }
  0x10   : > { %s192_s28 = scalar_lea.vmem %s1088_s0, %s945_s25  ;;  %s197_s8 = scalar_lea.vmem %s1092_s4, %s945_s25 }
  0x11   : > { %v198_v6 = vld [vmem:[%s192_s28] sm:$0xff]  ;;  %v199_v7 = vld [vmem:[%s192_s28 + $0x8] sm:$0xff]  ;;  %v200_v8 = vld [vmem:[%s192_s28 + $0x10] sm:$0xff] }
  0x12   : > { %839 = vmatprep.mubr.msk.f32.mxu0 %vm206_vm0, %v198_v6  ;;  %852 = vmatprep.mubr.msk.f32.mxu1 %vm206_vm0, %v198_v6  ;;  %v201_v9 = vld [vmem:[%s192_s28 + $0x18] sm:$0xff]  ;;  %v202_v10 = vld [vmem:[%s192_s28 + $0x20] sm:$0xff]  ;;  %v203_v11 = vld [vmem:[%s192_s28 + $0x28] sm:$0x7] }
  0x13   : > { %840 = vmatmul.mubr.msk.f32.vlgmr.msra.gmra.mrb[0].mxu0 %vm206_vm0, %v199_v7  ;;  %853 = vmatmul.mubr.msk.f32.vlgmr.msra.gmra.mrb[0].mxu1 %vm206_vm0, %v199_v7 }
  0x14   : > { %842 = vmatprep.mubr.msk.f32.mxu0 %vm206_vm0, %v200_v8  ;;  %855 = vmatprep.mubr.msk.f32.mxu1 %vm206_vm0, %v200_v8 }
  0x17   : > { %843 = vmatmul.mubr.msk.f32.gmra.mrb[2].mxu0 %vm206_vm0, %v201_v9  ;;  %856 = vmatmul.mubr.msk.f32.gmra.mrb[2].mxu1 %vm206_vm0, %v201_v9 }
  0x18   : > { %845 = vmatprep.mubr.msk.f32.mxu0 %vm206_vm0, %v202_v10  ;;  %858 = vmatprep.mubr.msk.f32.mxu1 %vm206_vm0, %v202_v10 }
  0x1b   : > { %846 = vmatmul.mubr.msk.f32.gmra.mrb[4].mxu0 %vm206_vm0, %v203_v11  ;;  %859 = vmatmul.mubr.msk.f32.gmra.mrb[4].mxu1 %vm206_vm0, %v203_v11 }
  0x1c   : > { %873 = vmatprep.mubr.msk.f32.mxu1 %vm431_vm1, %v772_v12  ;;  %894 = vmatprep.mubr.msk.f32.mxu0 %vm431_vm1, %v320_v13 }
  0xe6   : > { %v841_v14 = vpop.f32.mrb[0].mxu0  ;;  %v854_v15 = vpop.f32.mrb[0].mxu1 }
  0xe7   : > { %v291_v16 = vpop.f32.mrb[1].mxu0  ;;  %v395_v17 = vpop.f32.mrb[1].mxu1 }
  0xe8   : > { %v925_v18 = vpack.c.bf16 %v841_v14, %v291_v16  ;;  %v911_v19 = vpack.c.bf16 %v854_v15, %v395_v17 }
  0xea   : > { %v844_v20 = vpop.f32.mrb[2].mxu0  ;;  %v857_v21 = vpop.f32.mrb[2].mxu1  ;;  %912 = vmatprep.subr.bf16.mxu1 %v911_v19  ;;  %926 = vmatprep.subr.bf16.mxu0 %v925_v18 }
  0xeb   : > { %v301_v22 = vpop.f32.mrb[3].mxu0  ;;  %v405_v23 = vpop.f32.mrb[3].mxu1  ;;  %914 = vmatpush3.bf16.msra.mxu1 %v911_v19  ;;  %928 = vmatpush3.bf16.msra.mxu0 %v925_v18 }
  0xec   : > { %v929_v24 = vpack.c.bf16 %v844_v20, %v301_v22  ;;  %v915_v25 = vpack.c.bf16 %v857_v21, %v405_v23 }
  0xee   : > { %v847_v26 = vpop.f32.mrb[4].mxu0  ;;  %v860_v27 = vpop.f32.mrb[4].mxu1  ;;  %916 = vmatprep.subr.bf16.mxu1 %v915_v25  ;;  %930 = vmatprep.subr.bf16.mxu0 %v929_v24 }
  0xef   : > { %v311_v28 = vpop.f32.mrb[5].mxu0  ;;  %v415_v29 = vpop.f32.mrb[5].mxu1  ;;  %918 = vmatpush3.bf16.msra.mxu1 %v915_v25  ;;  %932 = vmatpush3.bf16.msra.mxu0 %v929_v24 }
  0xf0   : > { %v933_v30 = vpack.c.bf16 %v847_v26, %v311_v28  ;;  %v919_v31 = vpack.c.bf16 %v860_v27, %v415_v29 }
  0xf2   : > { %921 = vmatprep.subr.msk.bf16.mxu1 %vm920_vm4, %v919_v31  ;;  %935 = vmatprep.subr.msk.bf16.mxu0 %vm920_vm4, %v933_v30 }
  0xf3   : > { %924 = vmatpush3.bf16.msk.msra.mxu1 %vm920_vm4, %v919_v31  ;;  %938 = vmatpush3.bf16.msk.msra.mxu0 %vm920_vm4, %v933_v30 }
  0xf6   : > { %874 = vmatmul.mubr.msk.f32.vlgmr.msra.gmra.mrb[6].mxu1 %vm431_vm1, %v773_v32  ;;  %895 = vmatmul.mubr.msk.f32.vlgmr.msra.gmra.mrb[6].mxu0 %vm431_vm1, %v321_v33 }
  0xf7   : > { %876 = vmatprep.mubr.msk.f32.mxu1 %vm431_vm1, %v774_v34  ;;  %897 = vmatprep.mubr.msk.f32.mxu0 %vm431_vm1, %v322_v35 }
  0xfa   : > { %877 = vmatmul.mubr.msk.f32.gmra.mrb[8].mxu1 %vm431_vm1, %v775_v36  ;;  %898 = vmatmul.mubr.msk.f32.gmra.mrb[8].mxu0 %vm431_vm1, %v323_v37 }
  0xfb   : > { %879 = vmatprep.mubr.msk.f32.mxu1 %vm431_vm1, %v776_v38  ;;  %900 = vmatprep.mubr.msk.f32.mxu0 %vm431_vm1, %v324_v39 }
  0xfe   : > { %880 = vmatmul.mubr.msk.f32.gmra.mrb[10].mxu1 %vm431_vm1, %v777_v40  ;;  %901 = vmatmul.mubr.msk.f32.gmra.mrb[10].mxu0 %vm431_vm1, %v325_v41 }
 0x1c9   : > { %v875_v42 = vpop.f32.mrb[6].mxu1  ;;  %v896_v43 = vpop.f32.mrb[6].mxu0 }
 0x1ca   : > { %v642_v45 = vadd.f32 %v896_v43, %v875_v42  ;;  %v520_v46 = vpop.f32.mrb[7].mxu1  ;;  %v636_v47 = vpop.f32.mrb[7].mxu0 }
 0x1cb   : > { %v637_v48 = vadd.f32 %v636_v47, %v520_v46 }
 0x1cc   : > { %v673_v49 = vadd.f32 %v792_v44, %v642_v45 }
 0x1cd   : > { %v672_v50 = vadd.f32 %v792_v44, %v637_v48  ;;  %v878_v51 = vpop.f32.mrb[8].mxu1  ;;  %v899_v52 = vpop.f32.mrb[8].mxu0 }
 0x1ce   : > { %v679_v53 = vmul.f32 0.01, %v673_v49  ;;  %v652_v54 = vadd.f32 %v899_v52, %v878_v51  ;;  %v530_v55 = vpop.f32.mrb[9].mxu1  ;;  %v646_v56 = vpop.f32.mrb[9].mxu0 }
 0x1cf   : > { %v678_v57 = vmul.f32 0.01, %v672_v50  ;;  %v647_v58 = vadd.f32 %v646_v56, %v530_v55 }
 0x1d0   : > { %v685_v59 = vmax.f32 %v673_v49, %v679_v53  ;;  %v675_v60 = vadd.f32 %v792_v44, %v652_v54 }
 0x1d1   : > { %v684_v61 = vmax.f32 %v672_v50, %v678_v57  ;;  %v674_v62 = vadd.f32 %v792_v44, %v647_v58  ;;  %v881_v63 = vpop.f32.mrb[10].mxu1  ;;  %v902_v0 = vpop.f32.mrb[10].mxu0 }
 0x1d2   : > { %691 = vst [vmem:[%s197_s8 + $0x8] sm:$0xff] %v685_v59  ;;  %v681_v1 = vmul.f32 0.01, %v675_v60  ;;  %v662_v2 = vadd.f32 %v902_v0, %v881_v63  ;;  %v540_v3 = vpop.f32.mrb[11].mxu1  ;;  %v656_v4 = vpop.f32.mrb[11].mxu0 }
 0x1d3   : > { %690 = vst [vmem:[%s197_s8] sm:$0xff] %v684_v61  ;;  %v680_v5 = vmul.f32 0.01, %v674_v62  ;;  %v657_v6 = vadd.f32 %v656_v4, %v540_v3 }
 0x1d4   : > { %v687_v7 = vmax.f32 %v675_v60, %v681_v1  ;;  %v677_v8 = vadd.f32 %v792_v44, %v662_v2 }
 0x1d5   : > { %v686_v9 = vmax.f32 %v674_v62, %v680_v5  ;;  %v676_v10 = vadd.f32 %v792_v44, %v657_v6 }
 0x1d6   : > { %693 = vst [vmem:[%s197_s8 + $0x18] sm:$0xff] %v687_v7  ;;  %v683_v11 = vmul.f32 0.01, %v677_v8 }
 0x1d7   : > { %692 = vst [vmem:[%s197_s8 + $0x10] sm:$0xff] %v686_v9  ;;  %v682_v12 = vmul.f32 0.01, %v676_v10 }
 0x1d8   : > { %v689_v13 = vmax.f32 %v677_v8, %v683_v11 }
 0x1d9   : > { %v688_v14 = vmax.f32 %v676_v10, %v682_v12 }
 0x1da   : > { %695 = vst [vmem:[%s197_s8 + $0x28] sm:$0x7] %v689_v13 }
 0x1db   : > { %694 = vst [vmem:[%s197_s8 + $0x20] sm:$0xff] %v688_v14 }
 0x1dc PF: > { %s14_s15 = sadd.s32 1, %s961_s15  }
 0x1dd   : > { %p11_p4 = scmp.ge.s32.totalorder %s14_s15, 4  }
 0x1df   :  { %13 = sbr.rel (!%p11_p4) target bundleno = 1 (0x1), region = 68 }

</bundles_post_ra>
